<compile_context>
chip_gen: v6e
topology: v6e:2x2x1
jax: 0.10.0
libtpu: 0.0.40
codegen_flags: <defaults>
</compile_context>

<pallas_src>
import functools

import jax
import jax.numpy as jnp
from jax import lax
from jax.experimental import pallas as pl
from jax.experimental.pallas import tpu as pltpu


def _conv_in_lrelu_kernel(p_ref, w_ref, o_ref, sum_ref, ssq_ref):
    """One grid step = one (sample, Cout-tile, HW-tile).

    p_ref   : (CKK, tile_hw)   bf16 im2col patches for this HW tile
    w_ref   : (tile_cout, CKK) bf16 conv-weight slab for this Cout tile
    o_ref   : (tile_cout, HW)  bf16 output block, resident across HW tiles
    sum_ref : (tile_cout, 1)   f32 running per-channel sum of conv output
    ssq_ref : (tile_cout, 1)   f32 running per-channel sum of squares
    """
    t = pl.program_id(2)
    num_t = pl.num_programs(2)
    tile = p_ref.shape[1]
    hw = o_ref.shape[1]

    @pl.when(t == 0)
    def _():
        sum_ref[...] = jnp.zeros_like(sum_ref)
        ssq_ref[...] = jnp.zeros_like(ssq_ref)

    # Conv as a lane-dense MXU GEMM: (tile_cout, CKK) @ (CKK, tile) -> f32.
    y = jnp.dot(w_ref[...], p_ref[...], preferred_element_type=jnp.float32)

    # Single-pass statistics, taken from the f32 GEMM result *before* the
    # bf16 rounding of the stored activations.
    # TODO(synk): E[y^2]-mean^2 in f32 can cancel when |mean| >> std and HW is
    # very large; a Welford/Chan tile-combine would be more robust there.
    sum_ref[...] += jnp.sum(y, axis=1, keepdims=True)
    ssq_ref[...] += jnp.sum(y * y, axis=1, keepdims=True)

    if tile == hw:
        o_ref[...] = y.astype(o_ref.dtype)
    else:
        start = t * tile
        if tile % 128 == 0:
            start = pl.multiple_of(start, 128)
        o_ref[:, pl.ds(start, tile)] = y.astype(o_ref.dtype)

    @pl.when(t == num_t - 1)
    def _():
        # InstanceNorm2d (affine=False, eps=1e-5, biased variance) over HW,
        # then LeakyReLU(0.2).  Stats + normalization math in f32; resident
        # activations are bf16 (halved VMEM residency and store bytes).
        inv_hw = 1.0 / hw
        mean = sum_ref[...] * inv_hw                          # (tile_cout, 1)
        var = jnp.maximum(ssq_ref[...] * inv_hw - mean * mean, 0.0)
        inv_std = lax.rsqrt(var + 1e-5)                       # EUP slot
        y_all = o_ref[...].astype(jnp.float32)                # (tile_cout, HW)
        y_hat = (y_all - mean) * inv_std
        o_ref[...] = jnp.where(y_hat >= 0, y_hat, 0.2 * y_hat).astype(o_ref.dtype)


def _im2col_reflect(x, kernel, stride):
    """x: (N, Cin, H, W) -> patches (N, Cin*K*K, Ho*Wo), plus (Ho, Wo).

    Reflect padding with pad = kernel // 2 per side, matching padding='same' /
    padding_mode='reflect' for odd kernels (stride=1) and padding=int(K/2) for
    stride>1 in the PyTorch module.  The (CKK, HW) layout is already the
    lane-dense layout the kernel consumes (no transpose pass); with
    allow_input_fusion the producer can be fused into the Pallas call so the
    slab need not be materialized in HBM.
    """
    n, c, h, w = x.shape
    pad = kernel // 2
    xp = jnp.pad(x, ((0, 0), (0, 0), (pad, pad), (pad, pad)), mode="reflect")
    hp, wp = h + 2 * pad, w + 2 * pad
    ho = (hp - kernel) // stride + 1
    wo = (wp - kernel) // stride + 1

    slices = []
    for di in range(kernel):
        for dj in range(kernel):
            slices.append(
                xp[:, :, di : di + ho * stride : stride, dj : dj + wo * stride : stride]
            )
    # (N, Cin, K*K, Ho, Wo); flattening (Cin, K*K) -> ci*K*K + kh*K + kw matches
    # weight.reshape(Cout, Cin*K*K) ordering.
    p = jnp.stack(slices, axis=2)
    p = p.reshape(n, c * kernel * kernel, ho * wo)     # (N, CKK, HW)
    return p, ho, wo


def _vmem_budget_bytes():
    """~80% of physical VMEM (v5e/v6e: ~102 MiB, v7x: ~51 MiB), with fallback."""
    cap = 64 * 1024 * 1024   # conservative default = v7x physical VMEM
    try:
        info = pltpu.get_tpu_info()
        cap_attr = getattr(info, "vmem_capacity_bytes", None)
        if cap_attr:
            cap = int(cap_attr)
    except Exception:
        pass
    return max(int(cap * 0.8), 32 * 1024 * 1024)


def _pick_tile_cout(cout, hw, budget):
    """Full Cout if its bf16 resident block fits half the budget; else split.

    Splits only to divisors that keep the BlockSpec valid (== cout or %8==0),
    preferring 256-granular tiles (v6e/v7x MXU shape)."""
    valid = [d for d in range(cout, 0, -1)
             if cout % d == 0 and (d == cout or d % 8 == 0)]

    def fits(tc):                      # resident bf16 (tc, HW) block, x2 buffers
        return 2 * tc * hw * 2 <= budget // 2

    if fits(cout):
        return cout
    for d in valid:
        if d % 256 == 0 and fits(d):
            return d
    for d in valid:
        if fits(d):
            return d
    return valid[-1]


def _pick_tile_hw(hw, ckk, tile_cout, budget):
    """Largest HW tile whose double-buffered bf16 patch block fits what is left
    of the VMEM budget after the resident output + weight; 256-granular first."""
    resident = 2 * tile_cout * hw * 2          # bf16 resident output (x2)
    weight = 2 * tile_cout * ckk * 2           # bf16 weight slab (x2)
    avail = budget - resident - weight

    def fits(t):
        return 2 * ckk * t * 2 <= avail        # double-buffered bf16 patch tile

    if fits(hw):
        return hw
    for gran in (256, 128):                    # 256-granular preferred (MXU shape)
        cands = [t for t in range(gran, hw, gran) if hw % t == 0 and fits(t)]
        if cands:
            return max(cands)
    cands = [t for t in range(128, hw, 128) if hw % t == 0]
    return min(cands) if cands else hw


@functools.partial(
    jax.jit,
    static_argnames=("kernel", "stride", "tile_hw", "tile_cout", "vmem_limit",
                     "out_dtype"))
def _forward(x, weight, *, kernel, stride, tile_hw, tile_cout, vmem_limit,
             out_dtype):
    n, cin, _, _ = x.shape
    cout = weight.shape[0]
    ckk = cin * kernel * kernel

    patches, ho, wo = _im2col_reflect(x, kernel, stride)     # (N, CKK, HW)
    hw = ho * wo

    # bf16 MXU operands; accumulation and all norm math stay f32 in-kernel.
    patches = patches.astype(jnp.bfloat16)
    w2d = weight.reshape(cout, ckk).astype(jnp.bfloat16)      # (Cout, CKK)

    num_hw_tiles = hw // tile_hw
    num_cout_tiles = cout // tile_cout

    cost = pl.CostEstimate(
        flops=2 * n * hw * ckk * cout + 8 * n * hw * cout,
        transcendentals=n * cout,
        bytes_accessed=(num_cout_tiles * patches.size * patches.dtype.itemsize
                        + n * w2d.size * w2d.dtype.itemsize
                        + n * cout * hw * 2),
    )

    out = pl.pallas_call(
        _conv_in_lrelu_kernel,
        out_shape=jax.ShapeDtypeStruct((n, cout, hw), jnp.bfloat16),
        grid_spec=pltpu.PrefetchScalarGridSpec(
            num_scalar_prefetch=0,
            grid=(n, num_cout_tiles, num_hw_tiles),
            in_specs=[
                # squeezed batch dim -> kernel sees (CKK, tile_hw)
                pl.BlockSpec((None, ckk, tile_hw), lambda i, c, t: (i, 0, t)),
                # weight slab for this Cout tile; t-invariant (stays resident)
                pl.BlockSpec((tile_cout, ckk), lambda i, c, t: (c, 0)),
            ],
            # per-(sample, Cout-tile) output block resident across HW tiles
            out_specs=pl.BlockSpec((None, tile_cout, hw),
                                   lambda i, c, t: (i, c, 0)),
            scratch_shapes=[
                pltpu.VMEM((tile_cout, 1), jnp.float32),   # running sum
                pltpu.VMEM((tile_cout, 1), jnp.float32),   # running sum of sq.
            ],
        ),
        compiler_params=pltpu.CompilerParams(
            dimension_semantics=("parallel", "parallel", "arbitrary"),
            vmem_limit_bytes=vmem_limit,
            # let XLA fuse the im2col producer into the patch operand so the
            # (N, CKK, HW) slab is generated per block instead of hitting HBM
            allow_input_fusion=[True, False],
        ),
        cost_estimate=cost,
    )(patches, w2d)

    # (N, Cout, HW) is NCHW with flattened spatial: pure reshape, no transpose.
    out = out.reshape(n, cout, ho, wo)
    if out.dtype != out_dtype:
        out = out.astype(out_dtype)
    return out


def conv2d_block(x, weight, *, kernel, stride=1, tile_hw=None, tile_cout=None,
                 out_dtype=jnp.float32):
    """Forward pass of the PyTorch Conv2D module.

    x:      (N, Cin, H, W)    float32, NCHW
    weight: (Cout, Cin, K, K) float32 (PyTorch conv weight layout, no bias)
    returns (N, Cout, Ho, Wo) in `out_dtype` (float32 by default, matching the
            module; pass jnp.bfloat16 to skip the final upcast pass).
    """
    n, cin, h, w = x.shape
    cout = weight.shape[0]
    pad = kernel // 2
    assert pad < h and pad < w, "reflect padding requires kernel//2 < spatial dims"
    hp, wp = h + 2 * pad, w + 2 * pad
    ho = (hp - kernel) // stride + 1
    wo = (wp - kernel) // stride + 1
    hw = ho * wo
    ckk = cin * kernel * kernel

    budget = _vmem_budget_bytes()
    if tile_cout is None:
        tile_cout = _pick_tile_cout(cout, hw, budget)
    if tile_hw is None:
        tile_hw = _pick_tile_hw(hw, ckk, tile_cout, budget)

    assert cout % tile_cout == 0, "tile_cout must divide Cout"
    assert tile_cout == cout or tile_cout % 8 == 0
    assert hw % tile_hw == 0, "tile_hw must divide Ho*Wo"
    assert tile_hw == hw or tile_hw % 128 == 0

    return _forward(x, weight, kernel=kernel, stride=stride, tile_hw=tile_hw,
                    tile_cout=tile_cout, vmem_limit=budget, out_dtype=out_dtype)


def _reference(x, weight, kernel, stride):
    """Pure-JAX reference (lax.conv + instance norm + leaky relu), f32 math."""
    pad = kernel // 2
    xp = jnp.pad(x, ((0, 0), (0, 0), (pad, pad), (pad, pad)), mode="reflect")
    y = lax.conv_general_dilated(
        xp, weight, window_strides=(stride, stride), padding="VALID",
        dimension_numbers=("NCHW", "OIHW", "NCHW"))
    mean = jnp.mean(y, axis=(2, 3), keepdims=True)
    var = jnp.mean((y - mean) ** 2, axis=(2, 3), keepdims=True)
    yh = (y - mean) * lax.rsqrt(var + 1e-5)
    return jnp.where(yh >= 0, yh, 0.2 * yh)


def _run_case(key, n, cin, cout, h, w, k, stride, tile_hw, tile_cout, tol):
    kx, kw_ = jax.random.split(key)
    x = jax.random.normal(kx, (n, cin, h, w), dtype=jnp.float32)
    fan_in = cin * k * k
    weight = jax.random.normal(kw_, (cout, cin, k, k), dtype=jnp.float32) * (
        (2.0 / fan_in) ** 0.5)

    out = conv2d_block(x, weight, kernel=k, stride=stride,
                       tile_hw=tile_hw, tile_cout=tile_cout)
    out = jax.block_until_ready(out)

    # Reference with the same bf16-rounded GEMM operands (kernel accumulates
    # in f32); tolerance also covers the bf16 residency of the conv result.
    xb = x.astype(jnp.bfloat16).astype(jnp.float32)
    wb = weight.astype(jnp.bfloat16).astype(jnp.float32)
    ref = jax.block_until_ready(_reference(xb, wb, k, stride))

    assert out.shape == ref.shape, (out.shape, ref.shape)
    assert out.dtype == jnp.float32
    max_err = float(jnp.max(jnp.abs(out - ref)))
    assert max_err < tol, f"mismatch vs reference: {max_err}"
    return max_err


if __name__ == "__main__":
    key = jax.random.PRNGKey(0)
    k1, k2 = jax.random.split(key)

    # Case A: stride=1, multi HW tile (exercises the accumulate-then-normalize
    # InstanceNorm path across HW tiles).  N=2, Cin=4, Cout=8, 16x16, K=3.
    _run_case(k1, n=2, cin=4, cout=8, h=16, w=16, k=3, stride=1,
              tile_hw=128, tile_cout=None, tol=3e-2)

    # Case B: stride=2 with an explicit Cout split (exercises the new parallel
    # Cout grid axis and the single-HW-tile path).  N=1, Cin=4, Cout=32, 8x8.
    _run_case(k2, n=1, cin=4, cout=32, h=8, w=8, k=3, stride=2,
              tile_hw=None, tile_cout=16, tol=3e-2)

    print("KERNEL_OK")
</pallas_src>

<mosaic_0001>
module attributes {stable_mosaic.version = 11 : i64} {
  func.func @_conv_in_lrelu_kernel(%arg0: i32, %arg1: i32, %arg2: i32, %arg3: memref<1x36x128xbf16, #tpu.memory_space<vmem>>, %arg4: memref<8x36xbf16, #tpu.memory_space<vmem>>, %arg5: memref<1x8x256xbf16, #tpu.memory_space<vmem>>, %arg6: memref<8x1xf32, #tpu.memory_space<vmem>>, %arg7: memref<8x1xf32, #tpu.memory_space<vmem>>) attributes {dimension_semantics = [#tpu.dimension_semantics<parallel>, #tpu.dimension_semantics<parallel>, #tpu.dimension_semantics<arbitrary>], iteration_bounds = array<i64: 2, 1, 2>, scalar_prefetch = 0 : i64, scratch_operands = 2 : i64, tpu.core_type = #tpu.core_type<tc>, window_params = [{transform_indices = @transform_0, window_bounds = array<i64: 1, 36, 128>}, {transform_indices = @transform_1, window_bounds = array<i64: 8, 36>}, {transform_indices = @transform_2, window_bounds = array<i64: 1, 8, 256>}]} {
    %c0_i32 = arith.constant 0 : i32
    %0 = arith.cmpi eq, %arg2, %c0_i32 : i32
    %1 = arith.extui %0 : i1 to i32
    %c0_i32_0 = arith.constant 0 : i32
    %2 = arith.cmpi ne, %1, %c0_i32_0 : i32
    scf.if %2 {
      %cst_18 = arith.constant 0.000000e+00 : f32
      %28 = vector.broadcast %cst_18 : f32 to vector<8x1xf32>
      %c0_19 = arith.constant 0 : index
      %c0_20 = arith.constant 0 : index
      %29 = vector.load %arg6[%c0_19, %c0_20] : memref<8x1xf32, #tpu.memory_space<vmem>>, vector<8x1xf32>
      tpu.vector_store %arg6[%c0_19, %c0_20], %28 {strides = array<i32>} : memref<8x1xf32, #tpu.memory_space<vmem>>, vector<8x1xf32>,
      %cst_21 = arith.constant 0.000000e+00 : f32
      %30 = vector.broadcast %cst_21 : f32 to vector<8x1xf32>
      %c0_22 = arith.constant 0 : index
      %c0_23 = arith.constant 0 : index
      %31 = vector.load %arg7[%c0_22, %c0_23] : memref<8x1xf32, #tpu.memory_space<vmem>>, vector<8x1xf32>
      tpu.vector_store %arg7[%c0_22, %c0_23], %30 {strides = array<i32>} : memref<8x1xf32, #tpu.memory_space<vmem>>, vector<8x1xf32>,
    } else {
    }
    %c0 = arith.constant 0 : index
    %c0_1 = arith.constant 0 : index
    %3 = vector.load %arg4[%c0, %c0_1] : memref<8x36xbf16, #tpu.memory_space<vmem>>, vector<8x36xbf16>
    %c0_2 = arith.constant 0 : index
    %c0_3 = arith.constant 0 : index
    %c0_4 = arith.constant 0 : index
    %4 = vector.load %arg3[%c0_2, %c0_3, %c0_4] : memref<1x36x128xbf16, #tpu.memory_space<vmem>>, vector<1x36x128xbf16>
    %5 = vector.shape_cast %4 : vector<1x36x128xbf16> to vector<36x128xbf16>
    %cst = arith.constant dense<0.000000e+00> : vector<8x128xf32>
    %6 = tpu.matmul %3, %5, %cst {dimension_numbers = #tpu.dot_dimension_numbers<[1], [0], [0], [1], [0, 0, 1, 1], [], []>} : vector<8x36xbf16>, vector<36x128xbf16>, vector<8x128xf32> -> vector<8x128xf32>
    %c0_5 = arith.constant 0 : index
    %c0_6 = arith.constant 0 : index
    %7 = vector.load %arg6[%c0_5, %c0_6] : memref<8x1xf32, #tpu.memory_space<vmem>>, vector<8x1xf32>
    %cst_7 = arith.constant dense<0.000000e+00> : vector<8xf32>
    %8 = vector.multi_reduction <add>, %6, %cst_7 [1] : vector<8x128xf32> to vector<8xf32>
    %9 = vector.shape_cast %8 : vector<8xf32> to vector<8x1xf32>
    %10 = arith.addf %7, %9 : vector<8x1xf32>
    %c0_8 = arith.constant 0 : index
    %c0_9 = arith.constant 0 : index
    %11 = vector.load %arg6[%c0_8, %c0_9] : memref<8x1xf32, #tpu.memory_space<vmem>>, vector<8x1xf32>
    tpu.vector_store %arg6[%c0_8, %c0_9], %10 {strides = array<i32>} : memref<8x1xf32, #tpu.memory_space<vmem>>, vector<8x1xf32>,
    %c0_10 = arith.constant 0 : index
    %c0_11 = arith.constant 0 : index
    %12 = vector.load %arg7[%c0_10, %c0_11] : memref<8x1xf32, #tpu.memory_space<vmem>>, vector<8x1xf32>
    %13 = arith.mulf %6, %6 : vector<8x128xf32>
    %cst_12 = arith.constant dense<0.000000e+00> : vector<8xf32>
    %14 = vector.multi_reduction <add>, %13, %cst_12 [1] : vector<8x128xf32> to vector<8xf32>
    %15 = vector.shape_cast %14 : vector<8xf32> to vector<8x1xf32>
    %16 = arith.addf %12, %15 : vector<8x1xf32>
    %c0_13 = arith.constant 0 : index
    %c0_14 = arith.constant 0 : index
    %17 = vector.load %arg7[%c0_13, %c0_14] : memref<8x1xf32, #tpu.memory_space<vmem>>, vector<8x1xf32>
    tpu.vector_store %arg7[%c0_13, %c0_14], %16 {strides = array<i32>} : memref<8x1xf32, #tpu.memory_space<vmem>>, vector<8x1xf32>,
    %c128_i32 = arith.constant 128 : i32
    %18 = arith.muli %arg2, %c128_i32 : i32
    %19 = tpu.assume_multiple %18, 128 : i32
    %20 = arith.truncf %6 : vector<8x128xf32> to vector<8x128xbf16>
    %c0_15 = arith.constant 0 : index
    %c0_16 = arith.constant 0 : index
    %21 = arith.index_cast %19 : i32 to index
    %22 = vector.load %arg5[%c0_15, %c0_16, %21] : memref<1x8x256xbf16, #tpu.memory_space<vmem>>, vector<1x8x128xbf16>
    %23 = vector.shape_cast %22 : vector<1x8x128xbf16> to vector<8x128xbf16>
    %24 = vector.shape_cast %20 : vector<8x128xbf16> to vector<1x8x128xbf16>
    tpu.vector_store %arg5[%c0_15, %c0_16, %21], %24 {strides = array<i32>} : memref<1x8x256xbf16, #tpu.memory_space<vmem>>, vector<1x8x128xbf16>,
    %c1_i32 = arith.constant 1 : i32
    %25 = arith.cmpi eq, %arg2, %c1_i32 : i32
    %26 = arith.extui %25 : i1 to i32
    %c0_i32_17 = arith.constant 0 : i32
    %27 = arith.cmpi ne, %26, %c0_i32_17 : i32
    scf.if %27 {
      %c0_18 = arith.constant 0 : index
      %c0_19 = arith.constant 0 : index
      %28 = vector.load %arg6[%c0_18, %c0_19] : memref<8x1xf32, #tpu.memory_space<vmem>>, vector<8x1xf32>
      %cst_20 = arith.constant 3.906250e-03 : f32
      %29 = vector.broadcast %cst_20 : f32 to vector<8x1xf32>
      %30 = arith.mulf %28, %29 : vector<8x1xf32>
      %c0_21 = arith.constant 0 : index
      %c0_22 = arith.constant 0 : index
      %31 = vector.load %arg7[%c0_21, %c0_22] : memref<8x1xf32, #tpu.memory_space<vmem>>, vector<8x1xf32>
      %cst_23 = arith.constant 3.906250e-03 : f32
      %32 = vector.broadcast %cst_23 : f32 to vector<8x1xf32>
      %33 = arith.mulf %31, %32 : vector<8x1xf32>
      %34 = arith.mulf %30, %30 : vector<8x1xf32>
      %35 = arith.subf %33, %34 : vector<8x1xf32>
      %cst_24 = arith.constant 0.000000e+00 : f32
      %36 = vector.broadcast %cst_24 : f32 to vector<8x1xf32>
      %37 = arith.maximumf %35, %36 : vector<8x1xf32>
      %cst_25 = arith.constant 9.99999974E-6 : f32
      %38 = vector.broadcast %cst_25 : f32 to vector<8x1xf32>
      %39 = arith.addf %37, %38 : vector<8x1xf32>
      %40 = math.rsqrt %39 : vector<8x1xf32>
      %c0_26 = arith.constant 0 : index
      %c0_27 = arith.constant 0 : index
      %c0_28 = arith.constant 0 : index
      %41 = vector.load %arg5[%c0_26, %c0_27, %c0_28] : memref<1x8x256xbf16, #tpu.memory_space<vmem>>, vector<1x8x256xbf16>
      %42 = vector.shape_cast %41 : vector<1x8x256xbf16> to vector<8x256xbf16>
      %43 = arith.extf %42 : vector<8x256xbf16> to vector<8x256xf32>
      %44 = vector.broadcast %30 : vector<8x1xf32> to vector<8x256xf32>
      %45 = arith.subf %43, %44 : vector<8x256xf32>
      %46 = vector.broadcast %40 : vector<8x1xf32> to vector<8x256xf32>
      %47 = arith.mulf %45, %46 : vector<8x256xf32>
      %cst_29 = arith.constant 0.000000e+00 : f32
      %48 = vector.broadcast %cst_29 : f32 to vector<8x256xf32>
      %49 = arith.cmpf oge, %47, %48 : vector<8x256xf32>
      %cst_30 = arith.constant 2.000000e-01 : f32
      %50 = vector.broadcast %cst_30 : f32 to vector<8x256xf32>
      %51 = arith.mulf %50, %47 : vector<8x256xf32>
      %52 = arith.select %49, %47, %51 : vector<8x256xi1>, vector<8x256xf32>
      %53 = arith.truncf %52 : vector<8x256xf32> to vector<8x256xbf16>
      %c0_31 = arith.constant 0 : index
      %c0_32 = arith.constant 0 : index
      %c0_33 = arith.constant 0 : index
      %54 = vector.load %arg5[%c0_31, %c0_32, %c0_33] : memref<1x8x256xbf16, #tpu.memory_space<vmem>>, vector<1x8x256xbf16>
      %55 = vector.shape_cast %54 : vector<1x8x256xbf16> to vector<8x256xbf16>
      %56 = vector.shape_cast %53 : vector<8x256xbf16> to vector<1x8x256xbf16>
      tpu.vector_store %arg5[%c0_31, %c0_32, %c0_33], %56 {strides = array<i32>} : memref<1x8x256xbf16, #tpu.memory_space<vmem>>, vector<1x8x256xbf16>,
    } else {
    }
    return
  }
  func.func @transform_0(%arg0: i32, %arg1: i32, %arg2: i32) -> (i32, i32, i32) {
    %c0_i32 = arith.constant 0 : i32
    %c0_i32_0 = arith.constant 0 : i32
    return %arg0, %c0_i32, %arg2 : i32, i32, i32
  }
  func.func @transform_1(%arg0: i32, %arg1: i32, %arg2: i32) -> (i32, i32) {
    %c0_i32 = arith.constant 0 : i32
    %c0_i32_0 = arith.constant 0 : i32
    return %arg1, %c0_i32 : i32, i32
  }
  func.func @transform_2(%arg0: i32, %arg1: i32, %arg2: i32) -> (i32, i32, i32) {
    %c0_i32 = arith.constant 0 : i32
    %c0_i32_0 = arith.constant 0 : i32
    return %arg0, %arg1, %c0_i32 : i32, i32, i32
  }
}

</mosaic_0001>

<bundles_post_ra>
// kernel: _forward.1
= control target key start
LH: loop header
LB: loop body
LE: loop exit
PB: predicated region body
PF: predicated region fallthrough
CT: control target
= control target key end

     0   :  { %s689_s9 = smov 0   ;;  %s691_s10 = smov 0   ;;  %s789_s0 = inlined_call_operand.vmem [shape: bf16[2,36,256], index: 0, kind: input, shape index: {}]   ;;  %s790_s1 = inlined_call_operand.vmem [shape: bf16[8,36], index: 1, kind: input, shape index: {}]   ;;  %s791_s2 = inlined_call_operand.vmem [shape: bf16[2,8,256], index: 2, kind: output, shape index: {}]  }
   0x1   :  { %s693_s11 = smov 0   ;;  %s695_s12 = smov 0  }
   0x2   :  { %s697_s13 = smov 0   ;;  %s699_s14 = smov 0  }
   0x3   :  { %s701_s15 = smov 0  }
   0x4 LB: > { %s24_s16 = sadd.s32 1, %s660_s13  ;;  %s31_s17 = sadd.s32 1, %s664_s14  ;;  %s668_s15 = sphi %s701_s15, %s12_s15   ;;  %s664_s14 = sphi %s699_s14, %s797_s14   ;;  %s660_s13 = sphi %s697_s13, %s796_s13   ;;  %s656_s12 = sphi %s695_s12, %s795_s12   ;;  %s652_s11 = sphi %s693_s11, %s794_s11   ;;  %s648_s10 = sphi %s691_s10, %s793_s10   ;;  %s644_s9 = sphi %s689_s9, %s792_s9  }
   0x5   : > { %p25_p0 = scmp.ge.s32.totalorder %s24_s16, 2  ;;  %p47_p1 = scmp.ne.s32.totalorder %s648_s10, %s644_s9 }
   0x6   : > { %p48_p2 = scmp.eq.s32.totalorder %s668_s15, 0  ;;  %s40_s21 = sadd.s32 1, %s648_s10 }
   0x7   : > { %s799_s16 = smov (%p25_p0, %s24_s16), 0  ;;  %s801_s17 = smov (!%p25_p0, %s31_s17), %s664_s14 }
   0x8   : > { %p49_p3 = por %p48_p2, %p47_p1  ;;  %p33_p4 = scmp.ge.s32.totalorder %s801_s17, 2 }
   0x9   : > { %s36_s18 = ssub.s32 %s660_s13, %s799_s16  ;;  %p513_p6 = scmp.ge.s32.totalorder %s668_s15, 4 }
   0xa   : > { %s803_s17 = smov (%p33_p4, %s801_s17), 0 }
   0xb   : > { %s35_s19 = ssub.s32 %s664_s14, %s803_s17  ;;  %134 = sbr.rel (%p513_p6) target bundleno = 26 (0x1a), region = 20 }
   0xc   : > { %s37_s20 = sor.u32 %s36_s18, %s35_s19 }
   0xd   : > { %p38_p5 = scmp.eq.s32.totalorder %s37_s20, 0 }
   0xf   : > { %s740_s22 = scalar_select %p38_p5, %s648_s10, %s40_s21  }
  0x10   : > { %137 = sbr.rel (!%p49_p3) target bundleno = 26 (0x1a), region = 24  ;;  %s139_s23 = sand.u32 (%p49_p3), 1, %s648_s10  }
  0x11   : > { %s546_s24 = smul.u32 (%p49_p3), 10, %s664_s14 }
  0x12   : > { %s545_s25 = smul.u32 (%p49_p3), 20, %s139_s23 }
  0x13   : > { %s143_s26 = sadd.s32 (%p49_p3), %s660_s13, %s546_s24 }
  0x14   : > { %s514_s27 = sshll.u32 (%p49_p3), %s143_s26, 2  ;;  %s141_s3 = scalar_lea.vmem (%p49_p3), [#allocation4], %s545_s25 }
  0x15   : > { %s145_s30 = scalar_lea.vmem %s789_s0, %s514_s27 }
  0x16   : > { %v162_v0 = vld [vmem:[%s145_s30] sm:$0xf]  ;;  %v164_v1 = vld [vmem:[%s145_s30 + $0x8] sm:$0xf]  ;;  %v166_v2 = vld [vmem:[%s145_s30 + $0x10] sm:$0xf] }
  0x17   : > { %163 = vst [vmem:[%s141_s3] sm:$0xf] %v162_v0  ;;  %165 = vst [vmem:[%s141_s3 + $0x4] sm:$0xf] %v164_v1  ;;  %v168_v3 = vld [vmem:[%s145_s30 + $0x18] sm:$0xf] }
  0x18   : > { %167 = vst [vmem:[%s141_s3 + $0x8] sm:$0xf] %v166_v2  ;;  %v170_v4 = vld [vmem:[%s145_s30 + $0x20] sm:$0xf]  ;;  %169 = vst [vmem:[%s141_s3 + $0xc] sm:$0xf] %v168_v3 }
  0x19   : > { %171 = vst [vmem:[%s141_s3 + $0x10] sm:$0xf] %v170_v4 }
  0x1a PF: > { %p515_p7 = scmp.ge.s32.totalorder %s668_s15, 1  ;;  %p204_p8 = scmp.lt.s32.totalorder %s668_s15, 5 }
  0x1c   : > { %p205_p9 = pnand %p515_p7, %p204_p8 }
  0x1d   : > { %s211_s4 = sand.u32 (!%p205_p9), 1, %s644_s9   ;;  %p244_p10 = scmp.lt.s32.totalorder (!%p205_p9), %s656_s12, 1 }
  0x1e   : > { %208 = sbr.rel (%p205_p9) target bundleno = 554 (0x22a), region = 65  ;;  %p518_p11 = scmp.ne.s32.totalorder (!%p205_p9), %s652_s11, 0 }
  0x1f   : > { %s547_s5 = smul.u32 (!%p205_p9), 20, %s211_s4 }
  0x21   : > { %s213_s19 = scalar_lea.vmem (!%p205_p9), [#allocation4], %s547_s5 }
  0x23   : > { %s805_s12 = smov (!%p244_p10, %s656_s12), 1  ;;  %257 = sbr.rel (%p518_p11) target bundleno = 42 (0x2a), region = 73 }
  0x24   : > { %s529_s6 = sshll.u32 %s805_s12, 3 }
  0x25   : > { %s757_s18 = scalar_lea.vmem %s791_s2, %s529_s6 }
  0x28   : > { %vm258_vm0 = vcmask 7168   ;;  %v670_v5 = vmov 0.0  }
  0x29   : > { %259 = vst.msk [vmem:[#allocation2] sm:$0xff] %vm258_vm0, %v670_v5  ;;  %260 = vst.msk [vmem:[#allocation3] sm:$0xff] %vm258_vm0, %v670_v5 }
  0x2a PF: > { %v608_v6 = vld [vmem:[%s213_s19 + $0x10] ss:$0 sps:$4 sm:$0x33]   ;;  %v671_v7 = vmov 0.0   ;;  %vm286_vm1 = vcmask 1041408   ;;  %v609_v9 = vld [vmem:[%s213_s19 + $0x8] sm:$0xff]  }
  0x2b   : > { %535 = vmatprep.subr.bf16.mxu0 %v671_v7  ;;  %v288_v8 = vsel %vm286_vm1, %v608_v6, 0  ;;  %vm672_vm2 = vmmov 0   ;;  %v610_v10 = vld [vmem:[%s213_s19] sm:$0xff]   ;;  %v261_v11 = vld [vmem:[%s790_s1] sm:$0xf]  ;;  %vm282_vm3 = vcmask 293888  }
  0x2c   : > { %536 = vmatpush3.bf16.msra.mxu0 %v288_v8  ;;  %541 = vmatprep.mubr.msk.bf16.mxu0 %vm672_vm2, %v671_v7  ;;  %s523_s20 = sshll.u32 %s652_s11, 7  ;;  %vm334_vm4 = vcmask 7168   ;;  %p525_p12 = scmp.ne.s32.totalorder %s652_s11, 1 }
  0x2d   : > { %537 = vmatprep.subr.bf16.mxu0 %v671_v7  ;;  %s344_s21 = sshra.s32 %s523_s20, 7 }
  0x2e   : > { %s524_s23 = sshll.u32 %s344_s21, 2 }
  0x2f   : > { %s347_s24 = scalar_lea.vmem %s757_s18, %s524_s23 }
  0x30   : > { %538 = vmatpush3.bf16.msra.mxu0 %v609_v9  ;;  %v330_v18 = vld [vmem:[#allocation2] sm:$0xff]  ;;  %v336_v21 = vld [vmem:[#allocation3] sm:$0xff] }
  0x31   : > { %539 = vmatprep.subr.bf16.mxu0 %v671_v7 }
  0x34   : > { %540 = vmatpush3.bf16.msra.mxu0 %v610_v10 }
  0x37   : > { %542 = vmatmul.mubr.msk.bf16.vlgmr.msra.gmra.mxu0 %vm282_vm3, %v261_v11 }
  0xf7   : > { %v324_v12 = vpop.f32.mrf.mxu0 }
  0xf8   : > { %v343_v13 = vpack.c.bf16 %v324_v12, %v324_v12  ;;  %331 = vadd.xlane.f32.xlu0 %v324_v12  ;;  %v337_v15 = vmul.f32 %v324_v12, %v324_v12 }
  0xf9   : > { %v543_v14 = vpop.f32.mrf.mxu0 }
  0xfa   : > { %348 = vst [vmem:[%s347_s24] sm:$0xf] %v343_v13 }
  0xfb   : > { %v327_v16 = vpop.f32.mrf.mxu0 }
  0xfc   : > { %338 = vadd.xlane.f32.xlu0 %v337_v15 }
  0xfd   : > { %v544_v17 = vpop.f32.mrf.mxu0 }
 0x181   : > { %v332_v19 = vpop.xlane.xlu0 %331 }
 0x182   : > { %v333_v20 = vadd.f32 %v332_v19, %v330_v18 }
 0x184   : > { %335 = vst.msk [vmem:[#allocation2] sm:$0xff] %vm334_vm4, %v333_v20  ;;  %352 = sbr.rel (%p525_p12) target bundleno = 554 (0x22a), region = 77 }
 0x185   : > { %v339_v22 = vpop.xlane.xlu0 %338 }
 0x186   : > { %v340_v23 = vadd.f32 %v339_v22, %v336_v21 }
 0x188   : > { %341 = vst.msk [vmem:[#allocation3] sm:$0xff] %vm334_vm4, %v340_v23 }
 0x189   : > { %v673_v26 = vmov 0   ;;  %v362_v34 = vld [vmem:[%s757_s18] sm:$0xff] }
 0x18a   : > { %611 = vset.pattern.permute.xlu0 %v673_v26  ;;  %v363_v36 = vunpack.c.l.bf16 %v362_v34  ;;  %v364_v37 = vunpack.c.h.bf16 %v362_v34 }
 0x18b   : > { %v353_v24 = vld [vmem:[#allocation2] sm:$0xff] }
 0x18c   : > { %v354_v27 = vmul.f32 0.00390625, %v353_v24 }
 0x18e   : > { %367 = vperm.xlu0 %611, %v354_v27   ;;  %v357_v29 = vmul.f32 %v354_v27, %v354_v27 }
 0x18f   : > { %v355_v25 = vld [vmem:[#allocation3] sm:$0xff] }
 0x190   : > { %v356_v28 = vmul.f32 0.00390625, %v355_v25 }
 0x192   : > { %v358_v30 = vsub.f32 %v356_v28, %v357_v29 }
 0x194   : > { %v359_v31 = vmax.f32 %v358_v30, 0.0 }
 0x196   : > { %v360_v32 = vadd.f32 1e-05, %v359_v31 }
 0x198   : > { %612 = vrsqrt.f32 %v360_v32 }
 0x1a5   : > { %v613_v33 = vpop.eup %612 }
 0x1a6   : > { %374 = vperm.xlu0 %611, %v613_v33  }
 0x209   : > { %v368_v35 = vpop.permute.xlu0 %367 }
 0x20a   : > { %v370_v38 = vsub.f32 %v363_v36, %v368_v35  ;;  %v371_v39 = vsub.f32 %v364_v37, %v368_v35 }
 0x221   : > { %v375_v40 = vpop.permute.xlu0 %374 }
 0x222   : > { %v377_v41 = vmul.f32 %v375_v40, %v370_v38  ;;  %v378_v42 = vmul.f32 %v375_v40, %v371_v39 }
 0x224   : > { %vm379_vm5 = vcmp.ge.f32.partialorder %v377_v41, 0.0  ;;  %vm380_vm6 = vcmp.ge.f32.partialorder %v378_v42, 0.0  ;;  %v381_v43 = vmul.f32 0.2, %v377_v41  ;;  %v382_v44 = vmul.f32 0.2, %v378_v42 }
 0x226   : > { %v383_v45 = vsel %vm379_vm5, %v377_v41, %v381_v43  ;;  %v384_v46 = vsel %vm380_vm6, %v378_v42, %v382_v44 }
 0x227   : > { %v530_v47 = vpack.c.bf16 %v384_v46, %v383_v45 }
 0x229   : > { %393 = vst [vmem:[%s757_s18] sm:$0xff] %v530_v47 }
 0x22a PF: > { %s12_s15 = sadd.s32 1, %s668_s15   ;;  %s792_s9 = smov %s648_s10 }
 0x22b   : > { %p9_p13 = scmp.ge.s32.totalorder %s12_s15, 6   ;;  %s793_s10 = smov %s740_s22 }
 0x22c   : > { %s794_s11 = smov %s660_s13  ;;  %s795_s12 = smov %s664_s14 }
 0x22d   : > { %s796_s13 = smov %s799_s16  ;;  %s797_s14 = smov %s803_s17 }
 0x22e   :  { %11 = sbr.rel (!%p9_p13) target bundleno = 4 (0x4), region = 116 }

</bundles_post_ra>
